<compile_context>
chip_gen: v7x
topology: tpu7x:2x2x1
jax: 0.10.0
libtpu: 0.0.40
codegen_flags: <defaults>
</compile_context>

<pallas_src>
import functools

import jax
import jax.numpy as jnp
from jax.experimental import pallas as pl
from jax.experimental.pallas import tpu as pltpu


# --------------------------------------------------------------------------- #
# Generation-aware VMEM budgeting
# --------------------------------------------------------------------------- #
def _round_up(x, m):
    return ((x + m - 1) // m) * m


def _round_down(x, m):
    return (x // m) * m


def _vmem_capacity_bytes():
    try:
        info = pltpu.get_tpu_info()
        cap = getattr(info, "vmem_capacity_bytes", None)
        if cap:
            return int(cap)
    except Exception:
        pass
    return 64 * 1024 * 1024   # conservative default (v7x per-core VMEM)


_VMEM_CAPACITY = _vmem_capacity_bytes()
_VMEM_BUDGET = int(_VMEM_CAPACITY * 0.78)      # block-selection budget
_VMEM_LIMIT_CAP = int(_VMEM_CAPACITY * 0.88)   # leave Mosaic scratch headroom


def _vmem_limit(nbytes):
    return int(min(max(nbytes, 8 * 1024 * 1024), _VMEM_LIMIT_CAP))


# --------------------------------------------------------------------------- #
# Single-pass kernel: whole (C, HW) image slab(s) per grid step ("read x once").
# Per-image column-vector gate math: all matmuls are plain 2D, no reshapes, no
# transposes, and the squeeze accumulates in f32 on the MXU (no f32 slab temp).
# --------------------------------------------------------------------------- #
def _se_fused_kernel(x_ref, w1_ref, b1_ref, w2_ref, b2_ref, o_ref):
    # x_ref/o_ref: (b_blk, C, HW); w1: (RD, C); b1: (RD, 1); w2: (C, RD); b2: (C, 1)
    b_blk = x_ref.shape[0]
    hw = x_ref.shape[2]
    inv_hw = 1.0 / hw
    for i in range(b_blk):                                   # static unroll, b_blk <= 8
        xi = x_ref[i]                                        # (C, HW), native dtype
        # Squeeze: per-channel mean via an MXU ones-matmul (f32 accumulation).
        ones = jnp.ones((hw, 1), dtype=xi.dtype)
        pooled = jnp.dot(xi, ones, preferred_element_type=jnp.float32) * inv_hw  # (C, 1)
        # 1x1 conv reduce + SiLU (column form keeps channels on sublanes).
        h = jnp.dot(w1_ref[...], pooled,
                    preferred_element_type=jnp.float32) + b1_ref[...]            # (RD, 1)
        h = h * jax.nn.sigmoid(h)
        # 1x1 conv expand + sigmoid gate.
        g = jnp.dot(w2_ref[...], h,
                    preferred_element_type=jnp.float32) + b2_ref[...]            # (C, 1)
        gate = jax.nn.sigmoid(g)                                                  # f32
        # Excite: broadcast gate across lanes; multiply in f32, cast on store.
        o_ref[i] = (xi * gate).astype(o_ref.dtype)


# --------------------------------------------------------------------------- #
# Two-pass fallback for slabs that do not fit VMEM.
# Pass 1: tiled pooling with lane-parallel f32 partial sums; the cross-lane
#         reduce and the tiny gate matmuls run once, in the last HW tile, and
#         the per-(n, c) gate is emitted directly (no pooled HBM round trip).
# Pass 2: elementwise scale, parallel over (N, HW tiles).
# --------------------------------------------------------------------------- #
def _se_pool_gate_kernel(x_ref, w1_ref, b1_ref, w2_ref, b2_ref, gate_ref, acc_ref,
                         *, hw, t_hw, need_mask):
    t = pl.program_id(1)

    @pl.when(t == 0)
    def _init():
        acc_ref[...] = jnp.zeros_like(acc_ref)

    base = t * t_hw
    # Lane-parallel f32 partial sums (VPU adds) in 128-lane chunks; only one
    # cross-lane reduce happens, at the final tile.
    off = 0
    while off < t_hw:
        width = min(128, t_hw - off)
        chunk = x_ref[0, :, off:off + width].astype(jnp.float32)        # (C, width)
        if need_mask:
            col = base + off + jax.lax.broadcasted_iota(jnp.int32, chunk.shape, 1)
            chunk = jnp.where(col < hw, chunk, 0.0)                     # mask HW padding
        acc_ref[:, 0:width] += chunk
        off += width

    @pl.when(t == pl.num_programs(1) - 1)
    def _finalize():
        pooled = jnp.sum(acc_ref[...], axis=-1, keepdims=True) * (1.0 / hw)   # (C, 1)
        h = jnp.dot(w1_ref[...], pooled,
                    preferred_element_type=jnp.float32) + b1_ref[...]
        h = h * jax.nn.sigmoid(h)
        g = jnp.dot(w2_ref[...], h,
                    preferred_element_type=jnp.float32) + b2_ref[...]
        gate_ref[0] = jax.nn.sigmoid(g)                                       # (C, 1) f32


def _se_scale_kernel(x_ref, gate_ref, o_ref):
    # x_ref: (1, C, t_hw) native dtype; gate_ref: (1, C, 1) f32.
    # Multiply in f32 (auto-promotion), cast on store.
    o_ref[...] = (x_ref[...] * gate_ref[...]).astype(o_ref.dtype)


# --------------------------------------------------------------------------- #
# Wrapper
# --------------------------------------------------------------------------- #
def squeeze_excite_pallas(x_nchw, w_reduce, b_reduce, w_expand, b_expand,
                          *, force_two_pass=False, max_hw_tile=None):
    """x_nchw: (N, C, H, W). PyTorch-layout 1x1-conv weights:
       w_reduce: (RD, C, 1, 1), b_reduce: (RD,); w_expand: (C, RD, 1, 1), b_expand: (C,).
    """
    N, C, H, W = x_nchw.shape
    RD = w_reduce.shape[0]
    HW = H * W
    itemsize = jnp.dtype(x_nchw.dtype).itemsize

    # Free reshape (no transpose, no data movement).
    x = x_nchw.reshape(N, C, HW)
    # Column-form 1x1-conv weights: h = W1 @ pooled, g = W2 @ h (tiny, f32).
    w1 = w_reduce.reshape(RD, C).astype(jnp.float32)
    b1 = b_reduce.reshape(RD, 1).astype(jnp.float32)
    w2 = w_expand.reshape(C, RD).astype(jnp.float32)
    b2 = b_expand.reshape(C, 1).astype(jnp.float32)
    wbytes = 4 * (w1.size + b1.size + w2.size + b2.size)

    # Honest VMEM accounting: lane/sublane padded footprints (small-HW rows pad to
    # 128 lanes) + f32 temporaries + headroom.  The same formula drives both the
    # single-pass eligibility check and vmem_limit_bytes.
    c_pad = _round_up(C, 8)
    hw_pad = _round_up(HW, 128)
    slab_native = c_pad * hw_pad * itemsize           # one image, resident in VMEM
    slab_f32 = c_pad * hw_pad * 4
    headroom = 2 * 1024 * 1024

    def single_pass_bytes(b_blk):
        # 2x double-buffered input + 2x double-buffered output + f32 product temps
        # per image, plus one extra live block value, weights and headroom.
        return (b_blk * (4 * slab_native + 2 * slab_f32) + slab_native
                + 2 * wbytes + headroom)

    single_pass = (not force_two_pass) and single_pass_bytes(1) <= _VMEM_BUDGET

    if single_pass:
        # Largest batch block that (a) divides N, (b) fits the budget, and (c) keeps
        # the grid at >= 2 steps when N >= 2 so both v7x TensorCores get work
        # (on single-TC v5e/v6e the extra grid steps cost ~0.35us each -- negligible).
        b_cap = min(8, max(1, N // 2)) if N >= 2 else 1
        b_blk = 1
        for cand in range(b_cap, 0, -1):
            if N % cand == 0 and single_pass_bytes(cand) <= _VMEM_BUDGET:
                b_blk = cand
                break

        out = pl.pallas_call(
            _se_fused_kernel,
            out_shape=jax.ShapeDtypeStruct((N, C, HW), x.dtype),
            grid_spec=pltpu.PrefetchScalarGridSpec(
                num_scalar_prefetch=0,
                grid=(N // b_blk,),
                in_specs=[
                    pl.BlockSpec((b_blk, C, HW), lambda b: (b, 0, 0)),
                    pl.BlockSpec((RD, C), lambda b: (0, 0)),
                    pl.BlockSpec((RD, 1), lambda b: (0, 0)),
                    pl.BlockSpec((C, RD), lambda b: (0, 0)),
                    pl.BlockSpec((C, 1), lambda b: (0, 0)),
                ],
                out_specs=pl.BlockSpec((b_blk, C, HW), lambda b: (b, 0, 0)),
            ),
            compiler_params=pltpu.CompilerParams(
                dimension_semantics=("parallel",),
                vmem_limit_bytes=_vmem_limit(single_pass_bytes(b_blk)),
            ),
        )(x, w1, b1, w2, b2)
        return out.reshape(N, C, H, W)

    # ------------------ two-pass fallback (slab too large for VMEM) ------------------ #
    # Byte-budget tile sizing: accounts for C and dtype so 2x-in + 2x-out tiles plus
    # f32 temporaries stay inside the per-generation VMEM budget (critical on v7x).
    per_lane_bytes = c_pad * (4 * itemsize + 8)
    t_hw = _round_down(max(128, _VMEM_BUDGET // per_lane_bytes), 128)
    t_hw = max(128, t_hw)
    if max_hw_tile is not None:
        t_hw = max(128, _round_down(min(t_hw, max_hw_tile), 128))
    if t_hw >= HW:
        t_hw, n_t = HW, 1
    else:
        n_t = pl.cdiv(HW, t_hw)
    # Keep >= 2 grid steps for megacore (v7x) even when the batch alone cannot.
    if N == 1 and n_t == 1 and HW >= 256:
        t_hw = _round_up(pl.cdiv(HW, 2), 128)
        n_t = pl.cdiv(HW, t_hw)

    need_mask = (HW % t_hw) != 0
    tile_pad = _round_up(t_hw, 128)
    tile_native = c_pad * tile_pad * itemsize
    tile_f32 = c_pad * tile_pad * 4

    # Pass 1: pooling + gate.  Reduction axis (HW tiles) last / "arbitrary".
    gate = pl.pallas_call(
        functools.partial(_se_pool_gate_kernel, hw=HW, t_hw=t_hw, need_mask=need_mask),
        out_shape=jax.ShapeDtypeStruct((N, C, 1), jnp.float32),
        grid_spec=pltpu.PrefetchScalarGridSpec(
            num_scalar_prefetch=0,
            grid=(N, n_t),
            in_specs=[
                pl.BlockSpec((1, C, t_hw), lambda n, t: (n, 0, t)),
                pl.BlockSpec((RD, C), lambda n, t: (0, 0)),
                pl.BlockSpec((RD, 1), lambda n, t: (0, 0)),
                pl.BlockSpec((C, RD), lambda n, t: (0, 0)),
                pl.BlockSpec((C, 1), lambda n, t: (0, 0)),
            ],
            out_specs=pl.BlockSpec((1, C, 1), lambda n, t: (n, 0, 0)),
            scratch_shapes=[pltpu.VMEM((C, 128), jnp.float32)],
        ),
        compiler_params=pltpu.CompilerParams(
            dimension_semantics=("parallel", "arbitrary"),
            vmem_limit_bytes=_vmem_limit(
                2 * tile_native + 2 * tile_f32 + 2 * wbytes + headroom),
        ),
    )(x, w1, b1, w2, b2)

    # Pass 2: elementwise scale, parallel over (N, HW tiles) -- both TCs on v7x.
    out = pl.pallas_call(
        _se_scale_kernel,
        out_shape=jax.ShapeDtypeStruct((N, C, HW), x.dtype),
        grid_spec=pltpu.PrefetchScalarGridSpec(
            num_scalar_prefetch=0,
            grid=(N, n_t),
            in_specs=[
                pl.BlockSpec((1, C, t_hw), lambda n, t: (n, 0, t)),
                pl.BlockSpec((1, C, 1), lambda n, t: (n, 0, 0)),
            ],
            out_specs=pl.BlockSpec((1, C, t_hw), lambda n, t: (n, 0, t)),
        ),
        compiler_params=pltpu.CompilerParams(
            dimension_semantics=("parallel", "parallel"),
            vmem_limit_bytes=_vmem_limit(4 * tile_native + 2 * tile_f32 + headroom),
        ),
    )(x, gate)
    return out.reshape(N, C, H, W)


def squeeze_excite_ref(x_nchw, w_reduce, b_reduce, w_expand, b_expand):
    """Pure-JAX reference mirroring the PyTorch forward."""
    x_se = jnp.mean(x_nchw, axis=(2, 3), keepdims=True)                  # (N, C, 1, 1)
    RD, C = w_reduce.shape[0], w_reduce.shape[1]
    se = jnp.einsum('nchw,rc->nrhw', x_se, w_reduce.reshape(RD, C)) \
        + b_reduce[None, :, None, None]
    se = se * jax.nn.sigmoid(se)                                         # SiLU
    se = jnp.einsum('nrhw,cr->nchw', se, w_expand.reshape(C, RD)) \
        + b_expand[None, :, None, None]
    return x_nchw * jax.nn.sigmoid(se)


if __name__ == "__main__":
    key = jax.random.PRNGKey(0)
    N, C, H, W = 2, 4, 16, 16
    RD = max(1, round(C * 0.25))   # rd_ratio=0.25 -> 1

    k_x, k_w1, k_b1, k_w2, k_b2, k_x2, k_x3 = jax.random.split(key, 7)
    x = jax.random.normal(k_x, (N, C, H, W), dtype=jnp.float32)
    w_reduce = jax.random.normal(k_w1, (RD, C, 1, 1), dtype=jnp.float32) * 0.1
    b_reduce = jax.random.normal(k_b1, (RD,), dtype=jnp.float32) * 0.1
    w_expand = jax.random.normal(k_w2, (C, RD, 1, 1), dtype=jnp.float32) * 0.1
    b_expand = jax.random.normal(k_b2, (C,), dtype=jnp.float32) * 0.1

    # 1) Primary path: single-pass, batch-blocked, transpose-free.
    ref = squeeze_excite_ref(x, w_reduce, b_reduce, w_expand, b_expand)
    out = jax.block_until_ready(
        squeeze_excite_pallas(x, w_reduce, b_reduce, w_expand, b_expand))
    assert out.shape == (N, C, H, W)
    assert jnp.allclose(out, ref, atol=1e-5, rtol=1e-5), "single-pass mismatch"

    # 2) Two-pass fallback with several HW tiles and a partial (masked) last tile.
    x2 = jax.random.normal(k_x2, (N, C, 18, 18), dtype=jnp.float32)
    ref2 = squeeze_excite_ref(x2, w_reduce, b_reduce, w_expand, b_expand)
    out2 = jax.block_until_ready(
        squeeze_excite_pallas(x2, w_reduce, b_reduce, w_expand, b_expand,
                              force_two_pass=True, max_hw_tile=128))
    assert jnp.allclose(out2, ref2, atol=1e-5, rtol=1e-5), "two-pass mismatch"

    # 3) Single-pass on a lane-unfriendly spatial size (7x7) with bf16 storage
    #    (checks f32 gate multiply + cast-on-store).
    x3 = jax.random.normal(k_x3, (2, C, 7, 7), dtype=jnp.float32).astype(jnp.bfloat16)
    ref3 = squeeze_excite_ref(x3.astype(jnp.float32), w_reduce, b_reduce,
                              w_expand, b_expand)
    out3 = jax.block_until_ready(
        squeeze_excite_pallas(x3, w_reduce, b_reduce, w_expand, b_expand))
    assert jnp.allclose(out3.astype(jnp.float32), ref3, atol=5e-2, rtol=5e-2), \
        "bf16 small-HW mismatch"

    print("KERNEL_OK")
</pallas_src>

<mosaic_0001>
module attributes {stable_mosaic.version = 11 : i64} {
  func.func @_se_fused_kernel(%arg0: i32, %arg1: memref<1x4x256xf32, #tpu.memory_space<vmem>>, %arg2: memref<1x4xf32, #tpu.memory_space<vmem>>, %arg3: memref<1x1xf32, #tpu.memory_space<vmem>>, %arg4: memref<4x1xf32, #tpu.memory_space<vmem>>, %arg5: memref<4x1xf32, #tpu.memory_space<vmem>>, %arg6: memref<1x4x256xf32, #tpu.memory_space<vmem>>) attributes {dimension_semantics = [#tpu.dimension_semantics<parallel>], iteration_bounds = array<i64: 2>, scalar_prefetch = 0 : i64, scratch_operands = 0 : i64, tpu.core_type = #tpu.core_type<tc>, window_params = [{transform_indices = @transform_0, window_bounds = array<i64: 1, 4, 256>}, {pipeline_mode = #tpu.pipeline_mode<synchronous>, transform_indices = @transform_1, window_bounds = array<i64: 1, 4>}, {pipeline_mode = #tpu.pipeline_mode<synchronous>, transform_indices = @transform_2, window_bounds = array<i64: 1, 1>}, {pipeline_mode = #tpu.pipeline_mode<synchronous>, transform_indices = @transform_3, window_bounds = array<i64: 4, 1>}, {pipeline_mode = #tpu.pipeline_mode<synchronous>, transform_indices = @transform_4, window_bounds = array<i64: 4, 1>}, {transform_indices = @transform_5, window_bounds = array<i64: 1, 4, 256>}]} {
    %c0 = arith.constant 0 : index
    %c0_0 = arith.constant 0 : index
    %c0_1 = arith.constant 0 : index
    %0 = vector.load %arg1[%c0, %c0_0, %c0_1] : memref<1x4x256xf32, #tpu.memory_space<vmem>>, vector<1x4x256xf32>
    %1 = vector.shape_cast %0 : vector<1x4x256xf32> to vector<4x256xf32>
    %cst = arith.constant 1.000000e+00 : f32
    %2 = vector.broadcast %cst : f32 to vector<256x1xf32>
    %cst_2 = arith.constant dense<0.000000e+00> : vector<4x1xf32>
    %3 = tpu.matmul %1, %2, %cst_2 {dimension_numbers = #tpu.dot_dimension_numbers<[1], [0], [0], [1], [0, 0, 1, 1], [], []>} : vector<4x256xf32>, vector<256x1xf32>, vector<4x1xf32> -> vector<4x1xf32>
    %cst_3 = arith.constant 3.906250e-03 : f32
    %4 = vector.broadcast %cst_3 : f32 to vector<4x1xf32>
    %5 = arith.mulf %3, %4 : vector<4x1xf32>
    %c0_4 = arith.constant 0 : index
    %c0_5 = arith.constant 0 : index
    %6 = vector.load %arg2[%c0_4, %c0_5] : memref<1x4xf32, #tpu.memory_space<vmem>>, vector<1x4xf32>
    %cst_6 = arith.constant dense<0.000000e+00> : vector<1x1xf32>
    %7 = tpu.matmul %6, %5, %cst_6 {dimension_numbers = #tpu.dot_dimension_numbers<[1], [0], [0], [1], [0, 0, 1, 1], [], []>} : vector<1x4xf32>, vector<4x1xf32>, vector<1x1xf32> -> vector<1x1xf32>
    %c0_7 = arith.constant 0 : index
    %c0_8 = arith.constant 0 : index
    %8 = vector.load %arg3[%c0_7, %c0_8] : memref<1x1xf32, #tpu.memory_space<vmem>>, vector<1x1xf32>
    %9 = arith.addf %7, %8 : vector<1x1xf32>
    %10 = arith.negf %9 : vector<1x1xf32>
    %11 = math.exp %10 : vector<1x1xf32>
    %cst_9 = arith.constant 1.000000e+00 : f32
    %12 = vector.broadcast %cst_9 : f32 to vector<1x1xf32>
    %13 = arith.addf %12, %11 : vector<1x1xf32>
    %14 = arith.divf %12, %13 : vector<1x1xf32>
    %15 = arith.mulf %9, %14 : vector<1x1xf32>
    %c0_10 = arith.constant 0 : index
    %c0_11 = arith.constant 0 : index
    %16 = vector.load %arg4[%c0_10, %c0_11] : memref<4x1xf32, #tpu.memory_space<vmem>>, vector<4x1xf32>
    %cst_12 = arith.constant dense<0.000000e+00> : vector<4x1xf32>
    %17 = tpu.matmul %16, %15, %cst_12 {dimension_numbers = #tpu.dot_dimension_numbers<[1], [0], [0], [1], [0, 0, 1, 1], [], []>} : vector<4x1xf32>, vector<1x1xf32>, vector<4x1xf32> -> vector<4x1xf32>
    %c0_13 = arith.constant 0 : index
    %c0_14 = arith.constant 0 : index
    %18 = vector.load %arg5[%c0_13, %c0_14] : memref<4x1xf32, #tpu.memory_space<vmem>>, vector<4x1xf32>
    %19 = arith.addf %17, %18 : vector<4x1xf32>
    %20 = arith.negf %19 : vector<4x1xf32>
    %21 = math.exp %20 : vector<4x1xf32>
    %cst_15 = arith.constant 1.000000e+00 : f32
    %22 = vector.broadcast %cst_15 : f32 to vector<4x1xf32>
    %23 = arith.addf %22, %21 : vector<4x1xf32>
    %24 = arith.divf %22, %23 : vector<4x1xf32>
    %25 = vector.broadcast %24 : vector<4x1xf32> to vector<4x256xf32>
    %26 = arith.mulf %1, %25 : vector<4x256xf32>
    %c0_16 = arith.constant 0 : index
    %c0_17 = arith.constant 0 : index
    %c0_18 = arith.constant 0 : index
    %27 = vector.load %arg6[%c0_16, %c0_17, %c0_18] : memref<1x4x256xf32, #tpu.memory_space<vmem>>, vector<1x4x256xf32>
    %28 = vector.shape_cast %27 : vector<1x4x256xf32> to vector<4x256xf32>
    %29 = vector.shape_cast %26 : vector<4x256xf32> to vector<1x4x256xf32>
    tpu.vector_store %arg6[%c0_16, %c0_17, %c0_18], %29 {strides = array<i32>} : memref<1x4x256xf32, #tpu.memory_space<vmem>>, vector<1x4x256xf32>,
    return
  }
  func.func @transform_0(%arg0: i32) -> (i32, i32, i32) {
    %c0_i32 = arith.constant 0 : i32
    %c0_i32_0 = arith.constant 0 : i32
    %c0_i32_1 = arith.constant 0 : i32
    return %arg0, %c0_i32, %c0_i32_0 : i32, i32, i32
  }
  func.func @transform_1(%arg0: i32) -> (i32, i32) {
    %c0_i32 = arith.constant 0 : i32
    %c0_i32_0 = arith.constant 0 : i32
    %c0_i32_1 = arith.constant 0 : i32
    return %c0_i32, %c0_i32_0 : i32, i32
  }
  func.func @transform_2(%arg0: i32) -> (i32, i32) {
    %c0_i32 = arith.constant 0 : i32
    %c0_i32_0 = arith.constant 0 : i32
    %c0_i32_1 = arith.constant 0 : i32
    return %c0_i32, %c0_i32_0 : i32, i32
  }
  func.func @transform_3(%arg0: i32) -> (i32, i32) {
    %c0_i32 = arith.constant 0 : i32
    %c0_i32_0 = arith.constant 0 : i32
    %c0_i32_1 = arith.constant 0 : i32
    return %c0_i32, %c0_i32_0 : i32, i32
  }
  func.func @transform_4(%arg0: i32) -> (i32, i32) {
    %c0_i32 = arith.constant 0 : i32
    %c0_i32_0 = arith.constant 0 : i32
    %c0_i32_1 = arith.constant 0 : i32
    return %c0_i32, %c0_i32_0 : i32, i32
  }
  func.func @transform_5(%arg0: i32) -> (i32, i32, i32) {
    %c0_i32 = arith.constant 0 : i32
    %c0_i32_0 = arith.constant 0 : i32
    %c0_i32_1 = arith.constant 0 : i32
    return %arg0, %c0_i32, %c0_i32_0 : i32, i32, i32
  }
}

</mosaic_0001>

<bundles_post_ra>
// kernel: tpu_custom_call.1
= control target key start
LH: loop header
LB: loop body
LE: loop exit
PB: predicated region body
PF: predicated region fallthrough
CT: control target
= control target key end

     0   :  { %s1056_s0 = inlined_call_operand.hbm [shape: f32[2,4,256], index: 0, kind: input, shape index: {}]   ;;  %s1057_s1 = inlined_call_operand.vmem [shape: f32[1,4], index: 1, kind: input, shape index: {}]   ;;  %s1058_s2 = inlined_call_operand.<no memory space> [shape: f32[1,1], index: 2, kind: input, shape index: {}]   ;;  %s1059_s3 = inlined_call_operand.vmem [shape: f32[4,1], index: 3, kind: input, shape index: {}]   ;;  %s1060_s4 = inlined_call_operand.vmem [shape: f32[4,1], index: 4, kind: input, shape index: {}]   ;;  %s1061_s5 = inlined_call_operand.hbm [shape: f32[2,4,256], index: 5, kind: output, shape index: {}]  }
   0x1   :  { %v10_v0 = vstv %s1058_s2 }
   0x2   :  { %11 = vst [vmem:[#allocation2] sm:$0x1] %v10_v0 }
   0x3   :  { %12 = vsyncpa [#allocation4], 0 }
   0x4   :  { %14 = vsyncpa [#allocation4 + $0x1], 0 }
   0x5   :  { %15 = vsyncpa [#allocation5], 0 }
   0x6   :  { %17 = vsyncpa [#allocation5 + $0x1], 0  ;;  %s876_s20 = smov 0   ;;  %s878_s21 = smov 0  }
   0x7   :  { %s880_s22 = smov 0   ;;  %s882_s23 = smov 0  }
   0x8 LB: > { %s897_s2 = sadd.s32 4294967295, %s834_s23   ;;  %s590_s24 = sadd.s32 4294967294, %s834_s23   ;;  %s834_s23 = sphi %s882_s23, %s1076_s23   ;;  %s830_s22 = sphi %s880_s22, %s1075_s22   ;;  %s826_s21 = sphi %s878_s21, %s1074_s21   ;;  %s822_s20 = sphi %s876_s20, %s1073_s20  }
   0x9   : > { %s901_s25 = sadd.s32 1, %s834_s23   ;;  %s30_s26 = sadd.s32 1, %s830_s22 }
   0xa   : > { %s27_s27 = ssub.s32 %s834_s23, %s901_s25  ;;  %p37_p0 = scmp.ne.s32.totalorder %s830_s22, %s826_s21 }
   0xb   : > { %p28_p1 = scmp.eq.s32.totalorder %s27_s27, 0  ;;  %p38_p2 = scmp.eq.s32.totalorder %s834_s23, 0 }
   0xc   : > { %p43_p3 = scmp.ne.s32.totalorder %s826_s21, %s822_s20  ;;  %p44_p4 = scmp.eq.s32.totalorder %s897_s2, 0 }
   0xd   : > { %s913_s28 = scalar_select %p28_p1, %s830_s22, %s30_s26  }
   0xe   : > { %p915_p5 = por %p38_p2, %p37_p0  ;;  %p919_p6 = por %p44_p4, %p43_p3 }
   0xf   : > { %p151_p7 = scmp.eq.s32.totalorder %s897_s2, 1  ;;  %p157_p8 = scmp.eq.s32.totalorder %s590_s24, 1 }
  0x10   : > { %p689_p10 = scmp.lt.s32.totalorder %s834_s23, 2  ;;  %s189_s8 = sand.u32 1, %s830_s22  }
  0x11   : > { %p926_p11 = por %p151_p7, %p37_p0  ;;  %p930_p12 = por %p157_p8, %p43_p3 }
  0x12   : > { %s610_s9 = sshll.u32 %s834_s23, 7  ;;  %s593_s10 = sshll.u32 %s189_s8, 3 }
  0x13   : > { %s1065_s6 = scalar_select %p926_p11, 1, 0 }
  0x14   : > { %s1066_s7 = scalar_select %p930_p12, 1, 0 }
  0x15   : > { %s939_s13 = scalar_lea.hbm %s1056_s0, %s610_s9  ;;  %s193_s14 = scalar_lea.vmem [#allocation3], %s593_s10 }
  0x16   : > { %s201_s15 = sshll.u32 %s193_s14, 4  ;;  %p943_p13 = pnand %p689_p10, %p915_p5  ;;  %s947_s15 = int_to_ptr.vmem [resolvable:$true] %s201_s15 }
  0x17   : > { %s190_s17 = scalar_lea.sflag [#allocation4], %s189_s8  ;;  %s738_s18 = scalar_lea.hbm %s939_s13, 128 }
  0x18   : > { %p739_p2 = scmp.ne.s32.totalorder %s939_s13, %s738_s18  ;;  %p740_p3 = pneg %p943_p13 }
  0x19   : > { %s743_s26 = scalar_lea.hbm %s1056_s0, 256  ;;  %p744_p5 = scmp.lt.u32.totalorder %s939_s13, %s1056_s0 }
  0x1a   : > { %p741_p4 = pnand %p740_p3, %p739_p2  ;;  %p745_p8 = scmp.lt.u32.totalorder %s743_s26, %s738_s18 }
  0x1b   : > { %p747_p9 = scmp.lt.u32.totalorder %s738_s18, %s939_s13 }
  0x1c   : > { %p742_p7 = pneg %p741_p4  ;;  %p746_p10 = por %p745_p8, %p744_p5 }
  0x1e   : > { %p748_p0 = por %p747_p9, %p746_p10 }
  0x20   : > { %p749_p1 = pnand %p748_p0, %p742_p7 }
  0x22   : > { %752 = shalt.err (!%p749_p1)
}
  0x23   : > { %s753_s8 = scalar_lea.vmem %s947_s15, 128  ;;  %s836_s9 = smov [#allocation3]  }
  0x24   : > { %p754_p2 = scmp.ne.s32.totalorder %s947_s15, %s753_s8  ;;  %s758_s10 = sshll.u32 %s836_s9, 4  ;;  %s759_s10 = int_to_ptr.vmem [resolvable:$false] %s758_s10 }
  0x25   : > { %s760_s11 = scalar_lea.vmem %s759_s10, 256  ;;  %p761_p11 = scmp.lt.s32.totalorder %s947_s15, %s759_s10 }
  0x26   : > { %p756_p4 = pnand %p754_p2, %p740_p3  ;;  %p762_p5 = scmp.lt.s32.totalorder %s760_s11, %s753_s8 }
  0x28   : > { %p757_p12 = pneg %p756_p4  ;;  %p763_p8 = por %p762_p5, %p761_p11 }
  0x2a   : > { %p764_p9 = pnand %p763_p8, %p757_p12 }
  0x2c   : > { %767 = shalt.err (!%p764_p9)
}
  0x2d   : > { %684 = dma.hbm_to_vmem [thread:$0]  (!%p943_p13), %s939_s13, 128, %s947_s15, %s190_s17  }
  0x2e   : > { %p1068_p0 = scmp.lt.s32.totalorder %s834_s23, 3  ;;  %p1069_p1 = scmp.ge.s32.totalorder %s834_s23, 1 }
  0x30   : > { %p207_p3 = pnand %p1069_p1, %p1068_p0 }
  0x31   : > { %s981_s12 = sand.u32 (!%p207_p3), 1, %s826_s21  }
  0x32   : > { %210 = sbr.rel (%p207_p3) target bundleno = 938 (0x3aa), region = 40  ;;  %s597_s14 = sshll.u32 (!%p207_p3), %s981_s12, 3 }
  0x33   : > { %s213_s18 = scalar_lea.sflag (!%p207_p3), [#allocation4], %s981_s12  ;;  %s216_s16 = scalar_lea.vmem (!%p207_p3), [#allocation3], %s597_s14 }
  0x39   : > { %813 = dma.done.wait (%p919_p6), %s213_s18, 128  }
  0x3a   : > { %815 = vsyncadd (%p919_p6), %s213_s18, 4294967168  ;;  %v837_v1 = vmov 1.0|1.0   ;;  %v991_v2 = vld [vmem:[%s216_s16] sm:$0xff]  ;;  %v838_v4 = vmov 0.0   ;;  %vm839_vm0 = vmmov 0   ;;  %v498_v31 = vlaneseq }
  0x3b   : > { %661 = vmatprep.subr.bf16.mxu0 %v837_v1  ;;  %v245_v3 = vcombine.high %v991_v2, %v991_v2  ;;  %651 = vmatprep.subr.mxu1 %v838_v4  ;;  %vm324_vm1 = vcmask 1043456   ;;  %v318_v9 = vld [vmem:[%s1057_s1] sm:$0x1]  ;;  %vm320_vm2 = vcmask 31744   ;;  %vm411_vm3 = vcmask 1040384   ;;  %s611_s26 = sshll.u32 %s897_s2, 7 }
  0x3c   : > { %662 = vmatpush3.bf16.msra.mxu0 %v837_v1  ;;  %653 = vmatprep.mubr.msk.f32.mxu1 %vm839_vm0, %v838_v4  ;;  %v319_v10 = vld [vmem:[#allocation2] sm:$0x1]  ;;  %vm407_vm4 = vcmask 7168   ;;  %v840_v20 = vmov 0   ;;  %v841_v29 = vmov 839922192   ;;  %s1012_s10 = scalar_lea.hbm %s1061_s5, %s611_s26 }
  0x3d   : > { %663 = vmatprep.subr.bf16.mxu0 %v837_v1  ;;  %311 = vmatprep.mubr.f32.mxu0 %v245_v3  ;;  %v405_v19 = vld [vmem:[%s1059_s3] sm:$0xf]  ;;  %v496_v30 = vunpack.c.l.s4 %v841_v29  ;;  %v499_v33 = vshrl.u32 %v498_v31, 7  ;;  %s242_s27 = scalar_lea.vmem [#allocation6], %s597_s14  ;;  %s506_s11 = scalar_lea.sflag [#allocation5], %s981_s12 }
  0x3e   : > { %728 = vset.pattern.permute.xlu0 %v840_v20  ;;  %v406_v21 = vld [vmem:[%s1060_s4] sm:$0xf]  ;;  %s520_s29 = sshll.u32 %s242_s27, 4  ;;  %p1070_p11 = scmp.ne.s32.totalorder %s1065_s6, 0  ;;  %s1014_s29 = int_to_ptr.vmem [resolvable:$true] %s520_s29 }
  0x3f   : > { %v497_v32 = vunpack.c.0.s8 %v496_v30  ;;  %s768_s18 = scalar_lea.vmem %s1014_s29, 128  ;;  %s842_s2 = smov [#allocation6]  }
  0x40   : > { %664 = vmatpush3.bf16.msra.mxu0 %v837_v1  ;;  %p769_p6 = scmp.ne.s32.totalorder %s1014_s29, %s768_s18  ;;  %s772_s14 = sshll.u32 %s842_s2, 4  ;;  %s773_s14 = int_to_ptr.vmem [resolvable:$false] %s772_s14 }
  0x41   : > { %665 = vmatprep.subr.bf16.mxu0 %v837_v1  ;;  %v500_v34 = vsub.s32 %v497_v32, %v499_v33  ;;  %s774_s16 = scalar_lea.vmem %s773_s14, 256  ;;  %p775_p7 = scmp.lt.s32.totalorder %s1014_s29, %s773_s14 }
  0x42   : > { %p770_p12 = pnand %p769_p6, %p1070_p11  ;;  %p776_p10 = scmp.lt.s32.totalorder %s774_s16, %s768_s18 }
  0x44   : > { %666 = vmatpush3.bf16.msra.mxu0 %v837_v1  ;;  %p771_p13 = pneg %p770_p12  ;;  %p777_p2 = por %p776_p10, %p775_p7 }
  0x45   : > { %667 = vmatprep.subr.bf16.mxu0 %v837_v1 }
  0x46   : > { %p778_p4 = pnand %p777_p2, %p771_p13 }
  0x48   : > { %668 = vmatpush3.bf16.msra.mxu0 %v837_v1 }
  0x49   : > { %669 = vmatprep.subr.bf16.mxu0 %v837_v1 }
  0x4c   : > { %670 = vmatpush3.bf16.msra.mxu0 %v837_v1 }
  0x4d   : > { %671 = vmatprep.subr.bf16.mxu0 %v837_v1 }
  0x50   : > { %672 = vmatpush3.bf16.msra.mxu0 %v837_v1 }
  0x51   : > { %673 = vmatprep.subr.bf16.mxu0 %v837_v1 }
  0x54   : > { %674 = vmatpush3.bf16.msra.mxu0 %v837_v1 }
  0x55   : > { %675 = vmatprep.subr.bf16.mxu0 %v837_v1 }
  0x58   : > { %676 = vmatpush3.bf16.msra.mxu0 %v837_v1 }
  0x5b   : > { %312 = vmatmul.mubr.f32.vlgmr.msra.gmra.mrb[0].mxu0 %v991_v2 }
 0x12e   : > { %v644_v5 = vpop.f32.mrb[0].mxu0 }
 0x12f   : > { %v645_v6 = vpop.f32.mrb[1].mxu0 }
 0x130   : > { %v646_v7 = vadd.f32 %v645_v6, %v644_v5 }
 0x132   : > { %v317_v8 = vmul.f32 0.00390625, %v646_v7 }
 0x134   : > { %652 = vmatpush3.msk.msra.mxu1 %vm324_vm1, %v317_v8 }
 0x135   : > { %654 = vmatmul.mubr.msk.f32.vlgmr.msra.gmra.mrb[0].mxu1 %vm320_vm2, %v318_v9  ;;  %656 = vmatprep.subr.mxu1 %v838_v4 }
 0x136   : > { %658 = vmatprep.mubr.msk.f32.mxu1 %vm839_vm0, %v838_v4 }
 0x208   : > { %v394_v11 = vpop.f32.mrb[0].mxu1 }
 0x209   : > { %v395_v12 = vadd.f32 %v394_v11, %v319_v10  ;;  %v655_v13 = vpop.f32.mrb[1].mxu1 }
 0x20b   : > { %v601_v14 = vmul.f32 -1.442695, %v395_v12 }
 0x20d   : > { %730 = vpow2.f32 %v601_v14 }
 0x217   : > { %v731_v15 = vpop.eup %730 }
 0x218   : > { %v401_v16 = vadd.f32 1.0, %v731_v15 }
 0x21a   : > { %732 = vrcp.f32 %v401_v16 }
 0x224   : > { %v733_v17 = vpop.eup %732 }
 0x225   : > { %v404_v18 = vmul.f32 %v733_v17, %v395_v12 }
 0x227   : > { %657 = vmatpush3.msk.msra.mxu1 %vm411_vm3, %v404_v18 }
 0x228   : > { %659 = vmatmul.mubr.msk.f32.vlgmr.msra.gmra.mrb[2].mxu1 %vm407_vm4, %v405_v19 }
 0x2fb   : > { %v481_v22 = vpop.f32.mrb[2].mxu1 }
 0x2fc   : > { %v482_v23 = vadd.f32 %v481_v22, %v406_v21  ;;  %v660_v24 = vpop.f32.mrb[3].mxu1 }
 0x2fe   : > { %v604_v25 = vmul.f32 -1.442695, %v482_v23 }
 0x300   : > { %734 = vpow2.f32 %v604_v25 }
 0x30a   : > { %v735_v26 = vpop.eup %734 }
 0x30b   : > { %v488_v27 = vadd.f32 1.0, %v735_v26 }
 0x30d   : > { %736 = vrcp.f32 %v488_v27 }
 0x317   : > { %v737_v28 = vpop.eup %736 }
 0x318   : > { %493 = vperm.xlu0 %728, %v737_v28  }
 0x397   : > { %v494_v35 = vpop.permute.xlu0 %493 }
 0x398   : > { %v501_v36 = vrot.slane %v494_v35, %v500_v34 }
 0x39a   : > { %v503_v37 = vmul.f32 %v501_v36, %v991_v2 }
 0x39c   : > { %504 = vst [vmem:[%s242_s27] sm:$0xff] %v503_v37 }
 0x39d   : > { %781 = shalt.err (!%p778_p4)
}
 0x39e   : > { %s782_s12 = scalar_lea.hbm %s1012_s10, 128  ;;  %s786_s15 = scalar_lea.hbm %s1061_s5, 256 }
 0x39f   : > { %p783_p5 = scmp.ne.s32.totalorder %s1012_s10, %s782_s12  ;;  %p787_p0 = scmp.lt.u32.totalorder %s1012_s10, %s1061_s5 }
 0x3a0   : > { %p788_p1 = scmp.lt.u32.totalorder %s786_s15, %s782_s12  ;;  %p790_p6 = scmp.lt.u32.totalorder %s782_s12, %s1012_s10 }
 0x3a1   : > { %p784_p8 = pnand %p783_p5, %p1070_p11 }
 0x3a2   : > { %p789_p3 = por %p788_p1, %p787_p0 }
 0x3a3   : > { %p785_p9 = pneg %p784_p8 }
 0x3a4   : > { %p791_p12 = por %p790_p6, %p789_p3 }
 0x3a6   : > { %p792_p13 = pnand %p791_p12, %p785_p9 }
 0x3a8   : > { %795 = shalt.err (!%p792_p13)
}
 0x3a9   : > { %679 = dma.vmem_to_hbm [thread:$0]  (%p1070_p11), %s1014_s29, 128, %s1012_s10, %s506_s11  }
 0x3aa PF: > { %s532_s24 = sand.u32 1, %s822_s20   ;;  %p1071_p7 = scmp.ne.s32.totalorder %s1066_s7, 0 }
 0x3ab   : > { %p1072_p10 = scmp.ge.s32.totalorder %s834_s23, 2  ;;  %s533_s26 = scalar_lea.sflag [#allocation5], %s532_s24 }
 0x3ad   : > { %p686_p2 = pnand %p1072_p10, %p1071_p7 }
 0x3af   : > { %817 = dma.done.wait (!%p686_p2), %s533_s26, 128  }
 0x3b0   : > { %819 = vsyncadd (!%p686_p2), %s533_s26, 4294967168  ;;  %p20_p4 = scmp.ge.s32.totalorder %s901_s25, 4   ;;  %s1073_s20 = smov %s826_s21 }
 0x3b1   : > { %s1074_s21 = smov %s830_s22  ;;  %s1075_s22 = smov %s913_s28 }
 0x3b2   : > { %s1076_s23 = smov %s901_s25  ;;  %22 = sbr.rel (!%p20_p4) target bundleno = 8 (0x8), region = 85 }
 0x3b9   :  { %538 = vsyncpa [#allocation4], 1 }
 0x3ba   :  { %540 = vsyncpa [#allocation4 + $0x1], 1 }
 0x3bb   :  { %541 = vsyncpa [#allocation5], 1 }
 0x3bc   :  { %543 = vsyncpa [#allocation5 + $0x1], 1 }

</bundles_post_ra>
